<compile_context>
chip_gen: v7x
topology: tpu7x:2x2x1
jax: 0.10.0
libtpu: 0.0.40
codegen_flags: <defaults>
</compile_context>

<pallas_src>
import functools

import jax
import jax.numpy as jnp
from jax.experimental import pallas as pl
from jax.experimental.pallas import tpu as pltpu


def _round_up(x: int, m: int) -> int:
    return ((x + m - 1) // m) * m


def gaussian_policy_kernel(x_ref, w1_ref, b1_ref, w2_ref, b2_ref,
                           w3_ref, b3_ref, head_ref,
                           *, n_actions: int,
                           log_std_min: float, log_std_max: float):
    """One batch tile of the GaussianPolicy MLP.

    x: (TB, n_inputs); weights/biases resident in VMEM across grid steps.
    `head` is a single lane-dense (TB, HEAD_PAD>=128) slab holding
    [mean | log_std | zero pad], so the output store is one unmasked
    full-width vst instead of two masked sub-128-lane partial stores.
    """
    x = x_ref[...]
    h1 = jnp.dot(x, w1_ref[...], preferred_element_type=jnp.float32) + b1_ref[...]
    h1 = jnp.maximum(h1, 0.0)                                  # ReLU, f32 VPU
    h2 = jnp.dot(h1.astype(w2_ref.dtype), w2_ref[...],
                 preferred_element_type=jnp.float32) + b2_ref[...]
    h2 = jnp.maximum(h2, 0.0)
    head = jnp.dot(h2.astype(w3_ref.dtype), w3_ref[...],
                   preferred_element_type=jnp.float32) + b3_ref[...]
    # Fused torch.chunk + clamp: clamp only lanes [n_actions, 2*n_actions).
    lane = jax.lax.broadcasted_iota(jnp.int32, head.shape, dimension=1)
    is_log_std = jnp.logical_and(lane >= n_actions, lane < 2 * n_actions)
    head = jnp.where(is_log_std,
                     jnp.clip(head, log_std_min, log_std_max),
                     head)
    head_ref[...] = head.astype(head_ref.dtype)


def gaussian_policy_forward(state, params, *,
                            log_std_min: float = -20.0,
                            log_std_max: float = 2.0,
                            tb_max: int = 1024,
                            compute_dtype=jnp.float32):
    """Pallas-backed forward: (mean, log_std) = GaussianPolicy(state)."""
    w1, b1, w2, b2, w3, b3 = params
    # Accept PyTorch-style 1-D biases as well as (1, fan_out).
    b1, b2, b3 = (jnp.asarray(b).reshape(1, -1).astype(jnp.float32)
                  for b in (b1, b2, b3))
    B, n_inputs = state.shape
    two_na = w3.shape[-1]
    assert two_na % 2 == 0, "last layer must emit 2*n_actions features"
    n_actions = two_na // 2

    # Lane-dense head: pad the merged [mean | log_std] weight/bias to a
    # multiple of 128 lanes so the single output store is unmasked.
    head_pad = _round_up(max(two_na, 128), 128)
    w3p = jnp.zeros((w3.shape[0], head_pad), w3.dtype).at[:, :two_na].set(w3)
    b3p = jnp.zeros((1, head_pad), jnp.float32).at[:, :two_na].set(b3)

    # MXU operands optionally in bf16 (halves the state DMA, native MXU path
    # on v6e/v7x); elementwise bias/ReLU/clamp stay f32, accumulation is f32.
    state_c = state.astype(compute_dtype)
    w1c, w2c, w3c = (w.astype(compute_dtype) for w in (w1, w2, w3p))

    # Batch tiling: TB multiple of 8 (sublane), capped at tb_max rows.
    #  - tiny B : single tile (splitting would be pure padding waste)
    #  - mid B  : exactly 2 tiles so the "parallel" axis can shard across
    #             v7x's 2 TensorCores (harmless on v5e/v6e)
    #  - large B: tb_max-row tiles to amortize the ~0.35us/step grid overhead.
    if B <= 16:
        TB = _round_up(B, 8)
        B_pad = TB
    elif B <= 2 * tb_max:
        TB = _round_up(pl.cdiv(B, 2), 8)
        B_pad = 2 * TB
    else:
        TB = tb_max
        B_pad = _round_up(B, TB)
    if B_pad != B:
        state_c = jnp.pad(state_c, ((0, B_pad - B), (0, 0)))
    n_tiles = B_pad // TB

    def batch_spec(feat):
        return pl.BlockSpec((TB, feat), lambda i: (i, 0))

    def resident(shape):
        # Constant index_map -> DMA'd once, resident in VMEM across steps.
        # TODO(synk): pipeline_mode=pl.Buffered(1) would drop the unused second
        # buffer (~40 KB total) of each resident weight; skipped as a micro-opt.
        return pl.BlockSpec(shape, lambda i: (0, 0))

    kernel = functools.partial(gaussian_policy_kernel,
                               n_actions=n_actions,
                               log_std_min=log_std_min,
                               log_std_max=log_std_max)

    head = pl.pallas_call(
        kernel,
        out_shape=jax.ShapeDtypeStruct((B_pad, head_pad), jnp.float32),
        grid=(n_tiles,),
        in_specs=[
            batch_spec(n_inputs),
            resident(w1c.shape), resident(b1.shape),
            resident(w2c.shape), resident(b2.shape),
            resident(w3c.shape), resident(b3p.shape),
        ],
        out_specs=batch_spec(head_pad),
        compiler_params=pltpu.CompilerParams(
            dimension_semantics=("parallel",)),
    )(state_c, w1c, b1, w2c, b2, w3c, b3p)

    mean = head[:B, :n_actions]
    log_std = head[:B, n_actions:two_na]
    return mean, log_std


def init_gaussian_policy_params(key, n_inputs, n_actions):
    """Deterministic init mimicking nn.Linear default (U[-1/sqrt(fan_in), +])."""
    dims = [(n_inputs, 128), (128, 64), (64, 2 * n_actions)]
    params = []
    for (fan_in, fan_out) in dims:
        key, kw, kb = jax.random.split(key, 3)
        bound = 1.0 / jnp.sqrt(jnp.float32(fan_in))
        w = jax.random.uniform(kw, (fan_in, fan_out), jnp.float32, -bound, bound)
        b = jax.random.uniform(kb, (1, fan_out), jnp.float32, -bound, bound)
        params.extend([w, b])
    return tuple(params)


def gaussian_policy_ref(state, params, *, log_std_min=-20.0, log_std_max=2.0):
    """Pure-JAX reference for correctness check."""
    w1, b1, w2, b2, w3, b3 = params
    h1 = jnp.maximum(state @ w1 + b1.reshape(1, -1), 0.0)
    h2 = jnp.maximum(h1 @ w2 + b2.reshape(1, -1), 0.0)
    x = h2 @ w3 + b3.reshape(1, -1)
    n_actions = x.shape[-1] // 2
    mean = x[:, :n_actions]
    log_std = jnp.clip(x[:, n_actions:], log_std_min, log_std_max)
    return mean, log_std


if __name__ == "__main__":
    key = jax.random.PRNGKey(0)
    k_params, k_state, k_state2 = jax.random.split(key, 3)

    n_inputs, n_actions = 16, 4
    params = init_gaussian_policy_params(k_params, n_inputs, n_actions)

    # Small single-tile batch.
    B = 8
    state = jax.random.normal(k_state, (B, n_inputs), jnp.float32)
    mean, log_std = gaussian_policy_forward(state, params)
    jax.block_until_ready((mean, log_std))
    mean_ref, log_std_ref = gaussian_policy_ref(state, params)
    assert mean.shape == (B, n_actions) and log_std.shape == (B, n_actions)
    assert jnp.allclose(mean, mean_ref, atol=1e-5, rtol=1e-5)
    assert jnp.allclose(log_std, log_std_ref, atol=1e-5, rtol=1e-5)
    assert bool(jnp.all(log_std <= 2.0)) and bool(jnp.all(log_std >= -20.0))

    # Mid-size batch: exercises the 2-tile (v7x dual-TC) path + batch padding.
    B2 = 100
    state2 = jax.random.normal(k_state2, (B2, n_inputs), jnp.float32)
    mean2, log_std2 = gaussian_policy_forward(state2, params)
    jax.block_until_ready((mean2, log_std2))
    mean2_ref, log_std2_ref = gaussian_policy_ref(state2, params)
    assert mean2.shape == (B2, n_actions) and log_std2.shape == (B2, n_actions)
    assert jnp.allclose(mean2, mean2_ref, atol=1e-5, rtol=1e-5)
    assert jnp.allclose(log_std2, log_std2_ref, atol=1e-5, rtol=1e-5)

    # bf16 MXU-operand path (halves state DMA on v6e/v7x); f32 accumulation,
    # so comparison against the f32 reference uses relaxed tolerances.
    mean_bf, log_std_bf = gaussian_policy_forward(
        state2, params, compute_dtype=jnp.bfloat16)
    jax.block_until_ready((mean_bf, log_std_bf))
    assert jnp.allclose(mean_bf, mean2_ref, atol=5e-2, rtol=5e-2)
    assert jnp.allclose(log_std_bf, log_std2_ref, atol=5e-2, rtol=5e-2)

    # TODO(synk): GaussianPolicy.sample (Normal.rsample + log_prob) is plain
    # elementwise JAX glue on top of (mean, log_std); it could be fused
    # in-kernel with pltpu.prng_seed/prng_random_bits + EUP exp, but the spec
    # here is forward(), so it is not kernelized.

    print("KERNEL_OK")
</pallas_src>

<mosaic_0001>
module attributes {stable_mosaic.version = 11 : i64} {
  func.func @gaussian_policy_kernel(%arg0: i32, %arg1: memref<8x16xf32, #tpu.memory_space<vmem>>, %arg2: memref<16x128xf32, #tpu.memory_space<vmem>>, %arg3: memref<1x128xf32, #tpu.memory_space<vmem>>, %arg4: memref<128x64xf32, #tpu.memory_space<vmem>>, %arg5: memref<1x64xf32, #tpu.memory_space<vmem>>, %arg6: memref<64x128xf32, #tpu.memory_space<vmem>>, %arg7: memref<1x128xf32, #tpu.memory_space<vmem>>, %arg8: memref<8x128xf32, #tpu.memory_space<vmem>>) attributes {dimension_semantics = [#tpu.dimension_semantics<parallel>], iteration_bounds = array<i64: 1>, scalar_prefetch = 0 : i64, scratch_operands = 0 : i64, tpu.core_type = #tpu.core_type<tc>, window_params = [{transform_indices = @transform_0, window_bounds = array<i64: 8, 16>}, {pipeline_mode = #tpu.pipeline_mode<synchronous>, transform_indices = @transform_1, window_bounds = array<i64: 16, 128>}, {pipeline_mode = #tpu.pipeline_mode<synchronous>, transform_indices = @transform_2, window_bounds = array<i64: 1, 128>}, {pipeline_mode = #tpu.pipeline_mode<synchronous>, transform_indices = @transform_3, window_bounds = array<i64: 128, 64>}, {pipeline_mode = #tpu.pipeline_mode<synchronous>, transform_indices = @transform_4, window_bounds = array<i64: 1, 64>}, {pipeline_mode = #tpu.pipeline_mode<synchronous>, transform_indices = @transform_5, window_bounds = array<i64: 64, 128>}, {pipeline_mode = #tpu.pipeline_mode<synchronous>, transform_indices = @transform_6, window_bounds = array<i64: 1, 128>}, {transform_indices = @transform_7, window_bounds = array<i64: 8, 128>}]} {
    %c0 = arith.constant 0 : index
    %c0_0 = arith.constant 0 : index
    %0 = vector.load %arg1[%c0, %c0_0] : memref<8x16xf32, #tpu.memory_space<vmem>>, vector<8x16xf32>
    %c0_1 = arith.constant 0 : index
    %c0_2 = arith.constant 0 : index
    %1 = vector.load %arg2[%c0_1, %c0_2] : memref<16x128xf32, #tpu.memory_space<vmem>>, vector<16x128xf32>
    %cst = arith.constant dense<0.000000e+00> : vector<8x128xf32>
    %2 = tpu.matmul %0, %1, %cst {dimension_numbers = #tpu.dot_dimension_numbers<[1], [0], [0], [1], [0, 0, 1, 1], [], []>} : vector<8x16xf32>, vector<16x128xf32>, vector<8x128xf32> -> vector<8x128xf32>
    %c0_3 = arith.constant 0 : index
    %c0_4 = arith.constant 0 : index
    %3 = vector.load %arg3[%c0_3, %c0_4] : memref<1x128xf32, #tpu.memory_space<vmem>>, vector<1x128xf32>
    %4 = vector.broadcast %3 : vector<1x128xf32> to vector<8x128xf32>
    %5 = arith.addf %2, %4 : vector<8x128xf32>
    %cst_5 = arith.constant 0.000000e+00 : f32
    %6 = vector.broadcast %cst_5 : f32 to vector<8x128xf32>
    %7 = arith.maximumf %5, %6 : vector<8x128xf32>
    %c0_6 = arith.constant 0 : index
    %c0_7 = arith.constant 0 : index
    %8 = vector.load %arg4[%c0_6, %c0_7] : memref<128x64xf32, #tpu.memory_space<vmem>>, vector<128x64xf32>
    %cst_8 = arith.constant dense<0.000000e+00> : vector<8x64xf32>
    %9 = tpu.matmul %7, %8, %cst_8 {dimension_numbers = #tpu.dot_dimension_numbers<[1], [0], [0], [1], [0, 0, 1, 1], [], []>} : vector<8x128xf32>, vector<128x64xf32>, vector<8x64xf32> -> vector<8x64xf32>
    %c0_9 = arith.constant 0 : index
    %c0_10 = arith.constant 0 : index
    %10 = vector.load %arg5[%c0_9, %c0_10] : memref<1x64xf32, #tpu.memory_space<vmem>>, vector<1x64xf32>
    %11 = vector.broadcast %10 : vector<1x64xf32> to vector<8x64xf32>
    %12 = arith.addf %9, %11 : vector<8x64xf32>
    %cst_11 = arith.constant 0.000000e+00 : f32
    %13 = vector.broadcast %cst_11 : f32 to vector<8x64xf32>
    %14 = arith.maximumf %12, %13 : vector<8x64xf32>
    %c0_12 = arith.constant 0 : index
    %c0_13 = arith.constant 0 : index
    %15 = vector.load %arg6[%c0_12, %c0_13] : memref<64x128xf32, #tpu.memory_space<vmem>>, vector<64x128xf32>
    %cst_14 = arith.constant dense<0.000000e+00> : vector<8x128xf32>
    %16 = tpu.matmul %14, %15, %cst_14 {dimension_numbers = #tpu.dot_dimension_numbers<[1], [0], [0], [1], [0, 0, 1, 1], [], []>} : vector<8x64xf32>, vector<64x128xf32>, vector<8x128xf32> -> vector<8x128xf32>
    %c0_15 = arith.constant 0 : index
    %c0_16 = arith.constant 0 : index
    %17 = vector.load %arg7[%c0_15, %c0_16] : memref<1x128xf32, #tpu.memory_space<vmem>>, vector<1x128xf32>
    %18 = vector.broadcast %17 : vector<1x128xf32> to vector<8x128xf32>
    %19 = arith.addf %16, %18 : vector<8x128xf32>
    %20 = tpu.iota {dimensions = array<i32: 1>} : vector<8x128xi32>
    %c4_i32 = arith.constant 4 : i32
    %21 = vector.broadcast %c4_i32 : i32 to vector<8x128xi32>
    %22 = arith.cmpi sge, %20, %21 : vector<8x128xi32>
    %c8_i32 = arith.constant 8 : i32
    %23 = vector.broadcast %c8_i32 : i32 to vector<8x128xi32>
    %24 = arith.cmpi slt, %20, %23 : vector<8x128xi32>
    %25 = arith.andi %22, %24 : vector<8x128xi1>
    %cst_17 = arith.constant -2.000000e+01 : f32
    %cst_18 = arith.constant 2.000000e+00 : f32
    %26 = vector.broadcast %cst_17 : f32 to vector<8x128xf32>
    %27 = arith.maximumf %26, %19 : vector<8x128xf32>
    %28 = vector.broadcast %cst_18 : f32 to vector<8x128xf32>
    %29 = arith.minimumf %28, %27 : vector<8x128xf32>
    %30 = arith.select %25, %29, %19 : vector<8x128xi1>, vector<8x128xf32>
    %c0_19 = arith.constant 0 : index
    %c0_20 = arith.constant 0 : index
    %31 = vector.load %arg8[%c0_19, %c0_20] : memref<8x128xf32, #tpu.memory_space<vmem>>, vector<8x128xf32>
    tpu.vector_store %arg8[%c0_19, %c0_20], %30 {strides = array<i32>} : memref<8x128xf32, #tpu.memory_space<vmem>>, vector<8x128xf32>,
    return
  }
  func.func @transform_0(%arg0: i32) -> (i32, i32) {
    %c0_i32 = arith.constant 0 : i32
    %c0_i32_0 = arith.constant 0 : i32
    return %arg0, %c0_i32 : i32, i32
  }
  func.func @transform_1(%arg0: i32) -> (i32, i32) {
    %c0_i32 = arith.constant 0 : i32
    %c0_i32_0 = arith.constant 0 : i32
    %c0_i32_1 = arith.constant 0 : i32
    return %c0_i32, %c0_i32_0 : i32, i32
  }
  func.func @transform_2(%arg0: i32) -> (i32, i32) {
    %c0_i32 = arith.constant 0 : i32
    %c0_i32_0 = arith.constant 0 : i32
    %c0_i32_1 = arith.constant 0 : i32
    return %c0_i32, %c0_i32_0 : i32, i32
  }
  func.func @transform_3(%arg0: i32) -> (i32, i32) {
    %c0_i32 = arith.constant 0 : i32
    %c0_i32_0 = arith.constant 0 : i32
    %c0_i32_1 = arith.constant 0 : i32
    return %c0_i32, %c0_i32_0 : i32, i32
  }
  func.func @transform_4(%arg0: i32) -> (i32, i32) {
    %c0_i32 = arith.constant 0 : i32
    %c0_i32_0 = arith.constant 0 : i32
    %c0_i32_1 = arith.constant 0 : i32
    return %c0_i32, %c0_i32_0 : i32, i32
  }
  func.func @transform_5(%arg0: i32) -> (i32, i32) {
    %c0_i32 = arith.constant 0 : i32
    %c0_i32_0 = arith.constant 0 : i32
    %c0_i32_1 = arith.constant 0 : i32
    return %c0_i32, %c0_i32_0 : i32, i32
  }
  func.func @transform_6(%arg0: i32) -> (i32, i32) {
    %c0_i32 = arith.constant 0 : i32
    %c0_i32_0 = arith.constant 0 : i32
    %c0_i32_1 = arith.constant 0 : i32
    return %c0_i32, %c0_i32_0 : i32, i32
  }
  func.func @transform_7(%arg0: i32) -> (i32, i32) {
    %c0_i32 = arith.constant 0 : i32
    %c0_i32_0 = arith.constant 0 : i32
    return %arg0, %c0_i32 : i32, i32
  }
}

</mosaic_0001>

<bundles_post_ra>
// kernel: tpu_custom_call.1
= control target key start
LH: loop header
LB: loop body
LE: loop exit
PB: predicated region body
PF: predicated region fallthrough
CT: control target
= control target key end

     0   :  { %v480_v2 = vmov 0.0|0.0   ;;  %vm481_vm0 = vmmov 0   ;;  %v482_v4 = vmov 0.0   ;;  %vm37_vm1 = vcmask 130048   ;;  %s642_s0 = inlined_call_operand.vmem [shape: f32[8,16], index: 0, kind: input, shape index: {}]   ;;  %s643_s1 = inlined_call_operand.vmem [shape: f32[16,128], index: 1, kind: input, shape index: {}]   ;;  %s644_s2 = inlined_call_operand.vmem [shape: f32[1,128], index: 2, kind: input, shape index: {}]   ;;  %s645_s3 = inlined_call_operand.vmem [shape: f32[128,64], index: 3, kind: input, shape index: {}]   ;;  %s646_s4 = inlined_call_operand.vmem [shape: f32[1,64], index: 4, kind: input, shape index: {}]   ;;  %s647_s5 = inlined_call_operand.vmem [shape: f32[64,128], index: 5, kind: input, shape index: {}]   ;;  %s648_s6 = inlined_call_operand.vmem [shape: f32[1,128], index: 6, kind: input, shape index: {}]   ;;  %s649_s7 = inlined_call_operand.hbm [shape: f32[8,128], index: 7, kind: output, shape index: {}]  }
   0x1   :  { %v28_v0 = vld [vmem:[%s643_s1] sm:$0xff]  ;;  %v29_v1 = vld [vmem:[%s643_s1 + $0x8] sm:$0xff]  ;;  %413 = vmatprep.subr.bf16.mxu0 %v480_v2  ;;  %356 = vmatprep.mubr.msk.f32.mxu0 %vm481_vm0, %v482_v4  ;;  %v114_v7 = vld [vmem:[%s645_s3 + $0x10] sm:$0xff] }
   0x2   :  { %v414_v3 = vpack.c.bf16 %v29_v1, %v28_v0  ;;  %v112_v5 = vld [vmem:[%s645_s3] sm:$0xff]  ;;  %v113_v6 = vld [vmem:[%s645_s3 + $0x8] sm:$0xff]  ;;  %416 = vmatprep.subr.bf16.mxu1 %v480_v2  ;;  %v115_v9 = vld [vmem:[%s645_s3 + $0x18] sm:$0xff]  ;;  %391 = vmatprep.mubr.msk.f32.mxu1 %vm481_vm0, %v482_v4 }
   0x3   :  { %v417_v8 = vpack.c.bf16 %v113_v6, %v112_v5  ;;  %v27_v10 = vld [vmem:[%s642_s0] sm:$0xff]  ;;  %v420_v11 = vpack.c.bf16 %v115_v9, %v114_v7  ;;  %v117_v13 = vld [vmem:[%s645_s3 + $0x28] sm:$0xff] }
   0x4   :  { %415 = vmatpush3.bf16.msra.mxu0 %v414_v3  ;;  %v116_v12 = vld [vmem:[%s645_s3 + $0x20] sm:$0xff] }
   0x5   :  { %418 = vmatpush3.bf16.msra.mxu1 %v417_v8  ;;  %440 = vmatprep.subr.bf16.mxu0 %v480_v2 }
   0x6   :  { %419 = vmatprep.subr.bf16.mxu1 %v480_v2 }
   0x7   :  { %357 = vmatmul.mubr.msk.f32.vlgmr.msra.gmra.mrb[0].mxu0 %vm37_vm1, %v27_v10 }
   0x8   :  { %12 = vsyncpa [#allocation3], 0  ;;  %410 = vmatprep.mubr.msk.f32.mxu0 %vm481_vm0, %v482_v4  ;;  %v423_v14 = vpack.c.bf16 %v117_v13, %v116_v12  ;;  %v118_v15 = vld [vmem:[%s645_s3 + $0x30] sm:$0xff]  ;;  %v119_v16 = vld [vmem:[%s645_s3 + $0x38] sm:$0xff]  ;;  %vm221_vm2 = vcmask 523264   ;;  %v295_v52 = vlaneseq }
   0x9   :  { %421 = vmatpush3.bf16.msra.mxu1 %v420_v11  ;;  %v426_v17 = vpack.c.bf16 %v119_v16, %v118_v15  ;;  %v120_v18 = vld [vmem:[%s645_s3 + $0x40] sm:$0xff]  ;;  %v121_v19 = vld [vmem:[%s645_s3 + $0x48] sm:$0xff]  ;;  %v122_v21 = vld [vmem:[%s645_s3 + $0x50] sm:$0xff] }
   0xa   :  { %422 = vmatprep.subr.bf16.mxu1 %v480_v2  ;;  %v429_v20 = vpack.c.bf16 %v121_v19, %v120_v18  ;;  %v123_v22 = vld [vmem:[%s645_s3 + $0x58] sm:$0xff]  ;;  %v124_v24 = vld [vmem:[%s645_s3 + $0x60] sm:$0xff]  ;;  %v125_v25 = vld [vmem:[%s645_s3 + $0x68] sm:$0xff]  ;;  %v296_v53 = vand.u32 127, %v295_v52 }
   0xb   :  { %v432_v23 = vpack.c.bf16 %v123_v22, %v122_v21  ;;  %v435_v26 = vpack.c.bf16 %v125_v25, %v124_v24  ;;  %v126_v27 = vld [vmem:[%s645_s3 + $0x70] sm:$0xff]  ;;  %v127_v28 = vld [vmem:[%s645_s3 + $0x78] sm:$0xff]  ;;  %v206_v30 = vld [vmem:[%s647_s5] sm:$0xff] }
   0xc   :  { %v438_v29 = vpack.c.bf16 %v127_v28, %v126_v27  ;;  %v207_v31 = vld [vmem:[%s647_s5 + $0x8] sm:$0xff]  ;;  %v208_v32 = vld [vmem:[%s647_s5 + $0x10] sm:$0xff]  ;;  %v209_v34 = vld [vmem:[%s647_s5 + $0x18] sm:$0xff]  ;;  %vm297_vm3 = vcmp.ge.s32.totalorder %v296_v53, 4  ;;  %vm298_vm4 = vcmp.lt.s32.totalorder %v296_v53, 8 }
   0xd   :  { %424 = vmatpush3.bf16.msra.mxu1 %v423_v14  ;;  %v441_v33 = vpack.c.bf16 %v207_v31, %v206_v30  ;;  %v444_v35 = vpack.c.bf16 %v209_v34, %v208_v32  ;;  %v210_v36 = vld [vmem:[%s647_s5 + $0x20] sm:$0xff]  ;;  %v211_v37 = vld [vmem:[%s647_s5 + $0x28] sm:$0xff]  ;;  %v212_v44 = vld [vmem:[%s647_s5 + $0x30] sm:$0xff] }
   0xe   :  { %425 = vmatprep.subr.bf16.mxu1 %v480_v2  ;;  %v447_v38 = vpack.c.bf16 %v211_v37, %v210_v36  ;;  %v318_v39 = vld [vmem:[%s644_s2] ss:$0 sm:$0xff]  ;;  %v213_v45 = vld [vmem:[%s647_s5 + $0x38] sm:$0xff]  ;;  %s483_s5 = smov [#allocation2]   ;;  %vm299_vm5 = vmand %vm297_vm3, %vm298_vm4 }
   0xf   :  { %442 = vmatpush3.bf16.msra.mxu0 %v441_v33  ;;  %v450_v46 = vpack.c.bf16 %v213_v45, %v212_v44  ;;  %v320_v47 = vld [vmem:[%s646_s4] ss:$0 sm:$0xff]  ;;  %s310_s4 = sshll.u32 %s483_s5, 4  ;;  %s311_s4 = int_to_ptr.vmem [resolvable:$true] %s310_s4 }
  0x10   :  { %443 = vmatprep.subr.bf16.mxu0 %v480_v2  ;;  %v321_v54 = vld [vmem:[%s648_s6] ss:$0 sm:$0xff]  ;;  %s456_s9 = scalar_lea.vmem %s311_s4, 128  ;;  %p461_p1 = scmp.lt.s32.totalorder %s311_s4, %s311_s4 }
  0x11   :  { %427 = vmatpush3.bf16.msra.mxu1 %v426_v17  ;;  %p457_p0 = scmp.ne.s32.totalorder %s311_s4, %s456_s9  ;;  %p462_p2 = scmp.lt.s32.totalorder %s456_s9, %s456_s9 }
  0x12   :  { %428 = vmatprep.subr.bf16.mxu1 %v480_v2 }
  0x13   :  { %445 = vmatpush3.bf16.msra.mxu0 %v444_v35  ;;  %p463_p3 = por %p462_p2, %p461_p1 }
  0x14   :  { %446 = vmatprep.subr.bf16.mxu0 %v480_v2 }
  0x15   :  { %430 = vmatpush3.bf16.msra.mxu1 %v429_v20  ;;  %p464_p4 = pnand %p463_p3, %p457_p0 }
  0x16   :  { %431 = vmatprep.subr.bf16.mxu1 %v480_v2 }
  0x17   :  { %448 = vmatpush3.bf16.msra.mxu0 %v447_v38 }
  0x18   :  { %449 = vmatprep.subr.bf16.mxu0 %v480_v2 }
  0x19   :  { %433 = vmatpush3.bf16.msra.mxu1 %v432_v23 }
  0x1a   :  { %434 = vmatprep.subr.bf16.mxu1 %v480_v2 }
  0x1b   :  { %451 = vmatpush3.bf16.msra.mxu0 %v450_v46 }
  0x1d   :  { %436 = vmatpush3.bf16.msra.mxu1 %v435_v26 }
  0x1e   :  { %437 = vmatprep.subr.bf16.mxu1 %v480_v2 }
  0x21   :  { %439 = vmatpush3.bf16.msra.mxu1 %v438_v29 }
  0xda   :  { %v107_v40 = vpop.f32.mrb[0].mxu0 }
  0xdb   :  { %v108_v41 = vadd.f32 %v318_v39, %v107_v40  ;;  %v358_v42 = vpop.f32.mrb[1].mxu0 }
  0xdd   :  { %v111_v43 = vmax.f32 %v108_v41, 0.0 }
  0xdf   :  { %392 = vmatmul.mubr.f32.vlgmr.msra.gmra.mrb[0].mxu1 %v111_v43 }
 0x1b2   :  { %v201_v48 = vpop.f32.mrb[0].mxu1 }
 0x1b3   :  { %v202_v49 = vadd.f32 %v320_v47, %v201_v48  ;;  %v393_v50 = vpop.f32.mrb[1].mxu1 }
 0x1b5   :  { %v205_v51 = vmax.f32 %v202_v49, 0.0 }
 0x1b7   :  { %411 = vmatmul.mubr.msk.f32.vlgmr.msra.gmra.mrb[2].mxu0 %vm221_vm2, %v205_v51 }
 0x28a   :  { %v291_v55 = vpop.f32.mrb[2].mxu0 }
 0x28b   :  { %v292_v56 = vadd.f32 %v321_v54, %v291_v55  ;;  %v412_v57 = vpop.f32.mrb[3].mxu0 }
 0x28d   :  { %v300_v58 = vmax.f32 %v292_v56, -20.0 }
 0x28f   :  { %v301_v59 = vmin.f32 %v300_v58, 2.0 }
 0x291   :  { %v302_v60 = vsel %vm299_vm5, %v301_v59, %v292_v56 }
 0x292   :  { %303 = vst [vmem:[#allocation2] sm:$0xff] %v302_v60 }
 0x293   :  { %467 = shalt.err (!%p464_p4)
}
 0x294   :  { %s468_s1 = scalar_lea.hbm %s649_s7, 128 }
 0x295   :  { %p469_p5 = scmp.ne.s32.totalorder %s649_s7, %s468_s1  ;;  %p472_p6 = scmp.lt.u32.totalorder %s468_s1, %s649_s7 }
 0x297   :  { %p474_p7 = pnand %p472_p6, %p469_p5 }
 0x299   :  { %477 = shalt.err (!%p474_p7)
}
 0x29a   :  { %313 = dma.vmem_to_hbm [thread:$0]  %s311_s4, 128, %s649_s7, [#allocation3]  }
 0x29b   :  { %478 = dma.done.wait [#allocation3], 128  }
 0x29c   :  { %479 = vsyncadd [#allocation3], 4294967168 }
 0x29d   :  { %317 = vsyncpa [#allocation3], 1 }

</bundles_post_ra>
